<compile_context>
chip_gen: v7x
topology: tpu7x:2x2x1
jax: 0.10.0
libtpu: 0.0.40
codegen_flags: <defaults>
</compile_context>

<pallas_src>
import numpy as np
import jax
import jax.numpy as jnp
from jax.experimental import pallas as pl
from jax.experimental.pallas import tpu as pltpu


def _segmax_kernel(tile_ref, graph_ref, lo_ref, hi_ref, feat_ref, out_ref):
    """Grid = (d_tiles [parallel], n_steps [arbitrary]).

    Prefetched SMEM arrays (per step s): tile_ref (node-tile block index, used
    only by the index_map), graph_ref (target output row), lo_ref/hi_ref
    (valid row range inside the tile).  out_ref is the resident (B, TD)
    accumulator across the step axis.
    """
    del tile_ref  # consumed by the feat index_map only
    s = pl.program_id(1)

    if jnp.issubdtype(out_ref.dtype, jnp.floating):
        ident = float("-inf")
    else:
        ident = int(jnp.iinfo(out_ref.dtype).min)

    @pl.when(s == 0)
    def _init():
        out_ref[...] = jnp.full(out_ref.shape, ident, out_ref.dtype)

    b = graph_ref[s]
    lo = lo_ref[s]
    hi = hi_ref[s]

    feat = feat_ref[...]                                        # (T, TD)
    rows = jax.lax.broadcasted_iota(jnp.int32, (feat.shape[0], 1), 0)
    in_graph = (rows >= lo) & (rows < hi)                       # (T, 1) narrow mask
    masked = jnp.where(in_graph, feat, jnp.asarray(ident, feat.dtype))
    tile_max = jnp.max(masked, axis=0, keepdims=True)           # (1, TD)

    out_rows = jax.lax.broadcasted_iota(jnp.int32, (out_ref.shape[0], 1), 0)
    sel = out_rows == b                                         # (B, 1)
    cur = out_ref[...]
    out_ref[...] = jnp.where(sel, jnp.maximum(cur, tile_max), cur)


def _feat_index_map(d, s, tile_ref, graph_ref, lo_ref, hi_ref):
    return (tile_ref[s], d)


def _out_index_map(d, s, tile_ref, graph_ref, lo_ref, hi_ref):
    return (0, d)


def _round_up(x, m):
    return ((x + m - 1) // m) * m


def _choose_feature_tile(D, d_tile):
    """Largest 128-multiple divisor of D that is <= d_tile; full D otherwise.

    When D is 128-aligned and >= 256, keep at least 2 feature blocks so the
    'parallel' grid axis can shard across v7x's two TensorCores.
    """
    if D % 128 != 0:
        return D  # single full-width block (last block dim == full array dim)
    candidates = [128 * k for k in range(1, D // 128 + 1) if D % (128 * k) == 0]
    td = max(c for c in candidates if c <= d_tile)
    if D // td < 2 and D >= 256:
        td = max(c for c in candidates if c <= D // 2)
    return td


def max_pooling(feat, batch_num_nodes, *, node_tile=1024, d_tile=512):
    """Per-graph max pooling over concatenated node features (dgl.max_nodes).

    feat:            (N, D) node features of the batched graph, graphs concatenated.
    batch_num_nodes: host-side per-graph node counts (what a DGLGraph carries).
    returns:         (B, D), same dtype as feat; empty graphs get 0 (DGL behavior).
    """
    feat = jnp.asarray(feat)
    counts = np.asarray(batch_num_nodes, dtype=np.int64).reshape(-1)
    B = int(counts.shape[0])
    N, D = feat.shape
    assert int(counts.sum()) == N, "batch_num_nodes must sum to feat.shape[0]"

    if B == 0:
        return jnp.zeros((0, D), feat.dtype)
    if N == 0:
        return jnp.zeros((B, D), feat.dtype)

    # Node tile: big for bandwidth, clamped to the data, multiple of 32 so the
    # same block shape is legal for f32 / bf16 / int8 sublane packing.
    T = min(_round_up(max(node_tile, 32), 32), _round_up(N, 32))

    TD = _choose_feature_tile(D, d_tile)
    d_tiles = max(D // TD, 1)

    # Host-built step table: one entry per (graph, covering node tile), graphs
    # in order so the node-tile block index is non-decreasing (shared boundary
    # tiles repeat consecutively and are not re-DMA'd).
    # TODO(synk): this table needs concrete batch_num_nodes (same host metadata
    # DGL keeps); a fully traced variant would need a static chunk upper bound.
    offsets = np.concatenate([[0], np.cumsum(counts)])
    tiles, graphs, row_lo, row_hi = [], [], [], []
    for b in range(B):
        lo, hi = int(offsets[b]), int(offsets[b + 1])
        if lo == hi:
            continue  # empty graph: output row filled with 0 after the kernel
        for t in range(lo // T, (hi - 1) // T + 1):
            base = t * T
            tiles.append(t)
            graphs.append(b)
            row_lo.append(max(lo - base, 0))
            row_hi.append(min(hi - base, T))
    n_steps = len(tiles)
    tiles_a = jnp.asarray(tiles, jnp.int32)
    graphs_a = jnp.asarray(graphs, jnp.int32)
    row_lo_a = jnp.asarray(row_lo, jnp.int32)
    row_hi_a = jnp.asarray(row_hi, jnp.int32)

    # Explicit VMEM budget: 2 feat buffers + 2 output buffers + slack.
    itemsize = jnp.dtype(feat.dtype).itemsize
    vmem_bytes = 2 * T * TD * itemsize + 2 * _round_up(B, 8) * TD * itemsize
    vmem_bytes = int(min(max(vmem_bytes + (2 << 20), 4 << 20), 48 << 20))

    out = pl.pallas_call(
        _segmax_kernel,
        out_shape=jax.ShapeDtypeStruct((B, D), feat.dtype),
        grid_spec=pltpu.PrefetchScalarGridSpec(
            num_scalar_prefetch=4,
            grid=(d_tiles, n_steps),
            in_specs=[pl.BlockSpec((T, TD), _feat_index_map)],
            out_specs=pl.BlockSpec((B, TD), _out_index_map),
        ),
        compiler_params=pltpu.CompilerParams(
            dimension_semantics=("parallel", "arbitrary"),
            vmem_limit_bytes=vmem_bytes,
        ),
    )(tiles_a, graphs_a, row_lo_a, row_hi_a, feat)

    # DGL's readout fills empty graphs with 0 (not -inf / INT_MIN).
    nonempty = jnp.asarray(counts > 0).reshape(B, 1)
    out = jnp.where(nonempty, out, jnp.zeros((), out.dtype))
    # TODO(synk): for small / non-128-aligned D on v7x, a core-split over node
    # ranges (second parallel axis + final maximum) would use both TensorCores.
    return out


def _reference(feat, counts):
    counts = np.asarray(counts)
    seg = jnp.asarray(np.repeat(np.arange(counts.shape[0]), counts), jnp.int32)
    ref = jax.ops.segment_max(feat, seg, num_segments=int(counts.shape[0]))
    nonempty = jnp.asarray(counts > 0).reshape(-1, 1)
    return jnp.where(nonempty, ref, jnp.zeros((), ref.dtype))


if __name__ == "__main__":
    key = jax.random.PRNGKey(0)
    k1, k2 = jax.random.split(key)

    # Case 1: docstring-like batch of 2 graphs (3 and 5 nodes), feature size 32.
    counts1 = [3, 5]
    feat1 = jax.random.uniform(k1, (sum(counts1), 32), dtype=jnp.float32)
    out1 = jax.block_until_ready(max_pooling(feat1, counts1))
    ref1 = _reference(feat1, counts1)
    assert out1.shape == (2, 32)
    assert jnp.allclose(out1, ref1, atol=1e-6), "case 1 mismatch vs reference"

    # Case 2: ragged batch with an empty graph, multi-tile graph, and a
    # 128-aligned feature dim (exercises node chunking, shared boundary tiles,
    # empty-graph fill, and d_tiles >= 2).
    counts2 = [10, 0, 200, 37]
    feat2 = jax.random.normal(k2, (sum(counts2), 256), dtype=jnp.float32)
    out2 = jax.block_until_ready(max_pooling(feat2, counts2, node_tile=64))
    ref2 = _reference(feat2, counts2)
    assert out2.shape == (4, 256)
    assert jnp.allclose(out2, ref2, atol=1e-6), "case 2 mismatch vs reference"

    print("KERNEL_OK")
</pallas_src>

<mosaic_0001>
module attributes {stable_mosaic.version = 11 : i64} {
  func.func @_segmax_kernel(%arg0: i32, %arg1: i32, %arg2: memref<2xi32, #tpu.memory_space<smem>>, %arg3: memref<2xi32, #tpu.memory_space<smem>>, %arg4: memref<2xi32, #tpu.memory_space<smem>>, %arg5: memref<2xi32, #tpu.memory_space<smem>>, %arg6: memref<32x32xf32, #tpu.memory_space<vmem>>, %arg7: memref<2x32xf32, #tpu.memory_space<vmem>>) attributes {dimension_semantics = [#tpu.dimension_semantics<parallel>, #tpu.dimension_semantics<arbitrary>], iteration_bounds = array<i64: 1, 2>, scalar_prefetch = 4 : i64, scratch_operands = 0 : i64, tpu.core_type = #tpu.core_type<tc>, window_params = [{transform_indices = @transform_0, window_bounds = array<i64: 32, 32>}, {transform_indices = @transform_1, window_bounds = array<i64: 2, 32>}]} {
    %c0_i32 = arith.constant 0 : i32
    %0 = arith.cmpi eq, %arg1, %c0_i32 : i32
    %1 = arith.extui %0 : i1 to i32
    %c0_i32_0 = arith.constant 0 : i32
    %2 = arith.cmpi ne, %1, %c0_i32_0 : i32
    scf.if %2 {
      %cst_7 = arith.constant 0xFF800000 : f32
      %32 = vector.broadcast %cst_7 : f32 to vector<2x32xf32>
      %c0_8 = arith.constant 0 : index
      %c0_9 = arith.constant 0 : index
      %33 = vector.load %arg7[%c0_8, %c0_9] : memref<2x32xf32, #tpu.memory_space<vmem>>, vector<2x32xf32>
      tpu.vector_store %arg7[%c0_8, %c0_9], %32 {strides = array<i32>} : memref<2x32xf32, #tpu.memory_space<vmem>>, vector<2x32xf32>,
    } else {
    }
    %3 = arith.index_cast %arg1 : i32 to index
    %4 = memref.load %arg3[%3] : memref<2xi32, #tpu.memory_space<smem>>
    %5 = arith.index_cast %arg1 : i32 to index
    %6 = memref.load %arg4[%5] : memref<2xi32, #tpu.memory_space<smem>>
    %7 = arith.index_cast %arg1 : i32 to index
    %8 = memref.load %arg5[%7] : memref<2xi32, #tpu.memory_space<smem>>
    %c0 = arith.constant 0 : index
    %c0_1 = arith.constant 0 : index
    %9 = vector.load %arg6[%c0, %c0_1] : memref<32x32xf32, #tpu.memory_space<vmem>>, vector<32x32xf32>
    %10 = tpu.iota {dimensions = array<i32: 0>} : vector<32x1xi32>
    %11 = vector.broadcast %6 : i32 to vector<32x1xi32>
    %12 = arith.cmpi sge, %10, %11 : vector<32x1xi32>
    %13 = vector.broadcast %8 : i32 to vector<32x1xi32>
    %14 = arith.cmpi slt, %10, %13 : vector<32x1xi32>
    %15 = arith.andi %12, %14 : vector<32x1xi1>
    %cst = arith.constant 0xFF800000 : f32
    %16 = vector.shape_cast %15 : vector<32x1xi1> to vector<32x1xi1>
    %17 = vector.broadcast %16 : vector<32x1xi1> to vector<32x32xi1>
    %18 = vector.broadcast %cst : f32 to vector<32x32xf32>
    %19 = arith.select %17, %9, %18 : vector<32x32xi1>, vector<32x32xf32>
    %cst_2 = arith.constant dense<0xFF800000> : vector<32xf32>
    %20 = vector.multi_reduction <maximumf>, %19, %cst_2 [0] : vector<32x32xf32> to vector<32xf32>
    %21 = vector.shape_cast %20 : vector<32xf32> to vector<1x32xf32>
    %22 = tpu.iota {dimensions = array<i32: 0>} : vector<2x1xi32>
    %23 = vector.broadcast %4 : i32 to vector<2x1xi32>
    %24 = arith.cmpi eq, %22, %23 : vector<2x1xi32>
    %c0_3 = arith.constant 0 : index
    %c0_4 = arith.constant 0 : index
    %25 = vector.load %arg7[%c0_3, %c0_4] : memref<2x32xf32, #tpu.memory_space<vmem>>, vector<2x32xf32>
    %26 = vector.broadcast %21 : vector<1x32xf32> to vector<2x32xf32>
    %27 = arith.maximumf %25, %26 : vector<2x32xf32>
    %28 = vector.shape_cast %24 : vector<2x1xi1> to vector<2x1xi1>
    %29 = vector.broadcast %28 : vector<2x1xi1> to vector<2x32xi1>
    %30 = arith.select %29, %27, %25 : vector<2x32xi1>, vector<2x32xf32>
    %c0_5 = arith.constant 0 : index
    %c0_6 = arith.constant 0 : index
    %31 = vector.load %arg7[%c0_5, %c0_6] : memref<2x32xf32, #tpu.memory_space<vmem>>, vector<2x32xf32>
    tpu.vector_store %arg7[%c0_5, %c0_6], %30 {strides = array<i32>} : memref<2x32xf32, #tpu.memory_space<vmem>>, vector<2x32xf32>,
    return
  }
  func.func @transform_0(%arg0: i32, %arg1: i32, %arg2: memref<2xi32, #tpu.memory_space<smem>>, %arg3: memref<2xi32, #tpu.memory_space<smem>>, %arg4: memref<2xi32, #tpu.memory_space<smem>>, %arg5: memref<2xi32, #tpu.memory_space<smem>>) -> (i32, i32) {
    %0 = arith.index_cast %arg1 : i32 to index
    %1 = memref.load %arg2[%0] : memref<2xi32, #tpu.memory_space<smem>>
    %c0_i32 = arith.constant 0 : i32
    return %1, %arg0 : i32, i32
  }
  func.func @transform_1(%arg0: i32, %arg1: i32, %arg2: memref<2xi32, #tpu.memory_space<smem>>, %arg3: memref<2xi32, #tpu.memory_space<smem>>, %arg4: memref<2xi32, #tpu.memory_space<smem>>, %arg5: memref<2xi32, #tpu.memory_space<smem>>) -> (i32, i32) {
    %c0_i32 = arith.constant 0 : i32
    %c0_i32_0 = arith.constant 0 : i32
    return %c0_i32, %arg0 : i32, i32
  }
}

</mosaic_0001>

<bundles_post_ra>
// kernel: tpu_custom_call.1
= control target key start
LH: loop header
LB: loop body
LE: loop exit
PB: predicated region body
PF: predicated region fallthrough
CT: control target
= control target key end

     0   :  { %s575_s0 = inlined_call_operand.hbm [shape: s32[2], index: 0, kind: input, shape index: {}]   ;;  %s576_s4 = inlined_call_operand.vmem [shape: f32[8,32], index: 4, kind: input, shape index: {}]   ;;  %s577_s5 = inlined_call_operand.hbm [shape: f32[2,32], index: 5, kind: output, shape index: {}]   ;;  %s578_s1 = inlined_call_operand.vmem [shape: s32[2], index: 1, kind: input, shape index: {}]   ;;  %s579_s2 = inlined_call_operand.vmem [shape: s32[2], index: 2, kind: input, shape index: {}]   ;;  %s580_s3 = inlined_call_operand.vmem [shape: s32[2], index: 3, kind: input, shape index: {}]  }
   0x1   :  { %s346_s20 = scalar_lea.hbm %s575_s0, 16 }
   0x2   :  { %p347_p0 = scmp.ne.s32.totalorder %s575_s0, %s346_s20  ;;  %p350_p1 = scmp.lt.u32.totalorder %s346_s20, %s575_s0 }
   0x4   :  { %p352_p2 = pnand %p350_p1, %p347_p0 }
   0x6   :  { %355 = shalt.err (!%p352_p2)  }
   0x7   :  { %s448_s25 = smov [#allocation3]   ;;  %s12_s30 = sshll.u32 %s578_s1, 4  ;;  %s13_s30 = int_to_ptr.vmem [resolvable:$true] %s12_s30 }
   0x8   :  { %11 = dma.hbm_to_smem %s575_s0, 16, %s448_s25, [#allocation2] }
   0x9   :  { %s16_s8 = sshll.u32 %s579_s2, 4  ;;  %s356_s9 = scalar_lea.vmem %s13_s30, 16  ;;  %s17_s8 = int_to_ptr.vmem [resolvable:$true] %s16_s8 }
   0xa   :  { %p357_p3 = scmp.ne.s32.totalorder %s13_s30, %s356_s9  ;;  %p361_p4 = scmp.lt.s32.totalorder %s13_s30, %s13_s30 }
   0xb   :  { %p362_p5 = scmp.lt.s32.totalorder %s356_s9, %s356_s9 }
   0xd   :  { %p363_p6 = por %p362_p5, %p361_p4 }
   0xf   :  { %p364_p7 = pnand %p363_p6, %p357_p3 }
  0x11   :  { %367 = shalt.err (!%p364_p7)  }
  0x12   :  { %s449_s10 = smov [#allocation4]   ;;  %s20_s12 = sshll.u32 %s580_s3, 4  ;;  %s21_s12 = int_to_ptr.vmem [resolvable:$true] %s20_s12 }
  0x13   :  { %15 = dma.vmem_to_smem %s13_s30, 16, %s449_s10, [#allocation2] }
  0x14   :  { %s368_s1 = scalar_lea.vmem %s17_s8, 16  ;;  %p373_p9 = scmp.lt.s32.totalorder %s17_s8, %s17_s8 }
  0x15   :  { %p369_p8 = scmp.ne.s32.totalorder %s17_s8, %s368_s1  ;;  %p374_p10 = scmp.lt.s32.totalorder %s368_s1, %s368_s1 }
  0x17   :  { %p375_p11 = por %p374_p10, %p373_p9 }
  0x19   :  { %p376_p12 = pnand %p375_p11, %p369_p8 }
  0x1b   :  { %379 = shalt.err (!%p376_p12)  }
  0x1c   :  { %s450_s2 = smov [#allocation5]   ;;  %s380_s13 = scalar_lea.vmem %s21_s12, 16 }
  0x1d   :  { %19 = dma.vmem_to_smem %s17_s8, 16, %s450_s2, [#allocation2] }
  0x1e   :  { %p381_p13 = scmp.ne.s32.totalorder %s21_s12, %s380_s13  ;;  %p385_p0 = scmp.lt.s32.totalorder %s21_s12, %s21_s12 }
  0x1f   :  { %p386_p1 = scmp.lt.s32.totalorder %s380_s13, %s380_s13 }
  0x21   :  { %p387_p2 = por %p386_p1, %p385_p0 }
  0x23   :  { %p388_p3 = pnand %p387_p2, %p381_p13 }
  0x25   :  { %391 = shalt.err (!%p388_p3)  }
  0x26   :  { %s451_s14 = smov [#allocation6]  }
  0x27   :  { %23 = dma.vmem_to_smem %s21_s12, 16, %s451_s14, [#allocation2] }
  0x28   :  { %430 = dma.done.wait [#allocation2], 64 }
  0x29   :  { %431 = vsyncadd [#allocation2], 4294967232 }
  0x2a   :  { %25 = sfence }
  0x2b   :  { %26 = vsyncpa [#allocation8], 0  ;;  %s505_s3 = smov 0   ;;  %s507_s15 = smov 0  }
  0x2c   :  { %s509_s16 = smov 0  }
  0x2d LB: > { %s299_s17 = sadd.s32 4294967295, %s446_s16   ;;  %s41_s18 = sadd.s32 1, %s442_s15  ;;  %s446_s16 = sphi %s509_s16, %s32_s16   ;;  %s442_s15 = sphi %s507_s15, %s583_s15   ;;  %s438_s3 = sphi %s505_s3, %s582_s3  }
  0x2e   : > { %p42_p4 = scmp.ge.s32.totalorder %s41_s18, 2  ;;  %p302_p5 = scmp.ge.s32.totalorder %s446_s16, 1 }
  0x2f   : > { %p134_p6 = scmp.lt.s32.totalorder %s446_s16, 3 }
  0x30   : > { %s585_s18 = smov (%p42_p4, %s41_s18), 0 }
  0x31   : > { %p135_p7 = pnand %p302_p5, %p134_p6 }
  0x32   : > { %s155_s19 = sld [smem:[#allocation3 + %s438_s3]] (!%p135_p7)  ;;  %p305_p9 = scmp.ne.s32.totalorder (!%p135_p7), %s438_s3, 0 }
  0x33   : > { %138 = sbr.rel (%p135_p7) target bundleno = 114 (0x72), region = 24 }
  0x38   : > { %s303_s20 = sshll.u32 (!%p135_p7), %s155_s19, 2 }
  0x39   : > { %p159_p8 = scmp.lt.s32.totalorder (!%p135_p7), %s303_s20, 0 }
  0x3a   : > { %173 = sbr.rel (%p305_p9) target bundleno = 65 (0x41), region = 28  ;;  %vm174_vm0 = vcmask (!%p305_p9), 254976   ;;  %v452_v0 = vmov (!%p305_p9), -inf  }
  0x3b   : > { %s587_s20 = smov (!%p159_p8, %s303_s20), 0  ;;  %175 = vst.msk [vmem:[#allocation7] sm:$0x3] (!%p305_p9), %vm174_vm0, %v452_v0 }
  0x3c   : > { %s304_s21 = sshll.u32 %s587_s20, 3 }
  0x3d   : > { %s165_s24 = scalar_lea.vmem %s576_s4, %s304_s21 }
  0x41 PF: > { %s177_s25 = sld [smem:[#allocation5 + %s438_s3]]  ;;  %v183_v1 = vlaneseq  ;;  %v179_v7 = vld [vmem:[%s165_s24] sm:$0xff]  ;;  %vm214_vm3 = vcmask 261120   ;;  %v180_v9 = vld [vmem:[%s165_s24 + $0x8] sm:$0xff]  ;;  %v181_v10 = vld [vmem:[%s165_s24 + $0x10] sm:$0xff]  ;;  %s453_s28 = smov [#allocation7]  }
  0x42   : > { %s178_s26 = sld [smem:[#allocation6 + %s438_s3]]  ;;  %v182_v11 = vld [vmem:[%s165_s24 + $0x18] sm:$0xff]  ;;  %v230_v29 = vld [vmem:[#allocation7] sm:$0x3]  ;;  %s246_s29 = sshll.u32 %s453_s28, 4  ;;  %vm235_vm15 = vcmask 254976   ;;  %s247_s29 = int_to_ptr.vmem [resolvable:$true] %s246_s29 }
  0x43   : > { %v184_v2 = vshrl.u32 %v183_v1, 7  ;;  %s176_s27 = sld [smem:[#allocation4 + %s438_s3]]  ;;  %p540_p10 = scmp.eq.s32.totalorder %s299_s17, 1 }
  0x44   : > { %s392_s6 = scalar_lea.vmem %s247_s29, 32  ;;  %p399_p0 = scmp.lt.s32.totalorder %s247_s29, %s247_s29 }
  0x45   : > { %v185_v3 = vadd.s32 8, %v184_v2  ;;  %v186_v4 = vadd.s32 16, %v184_v2  ;;  %v187_v5 = vadd.s32 24, %v184_v2  ;;  %p393_p11 = scmp.ne.s32.totalorder %s247_s29, %s392_s6  ;;  %p400_p1 = scmp.lt.s32.totalorder %s392_s6, %s392_s6 }
  0x47   : > { %v188_v6 = vstv %s177_s25  ;;  %p394_p12 = pnand %p393_p11, %p540_p10  ;;  %p401_p2 = por %p400_p1, %p399_p0 }
  0x48   : > { %vm189_vm1 = vcmp.ge.s32.totalorder %v184_v2, %v188_v6  ;;  %vm190_vm2 = vcmp.ge.s32.totalorder %v185_v3, %v188_v6  ;;  %v193_v8 = vstv %s178_s26  ;;  %vm191_vm4 = vcmp.ge.s32.totalorder %v186_v4, %v188_v6 }
  0x49   : > { %vm194_vm5 = vcmp.lt.s32.totalorder %v184_v2, %v193_v8  ;;  %vm195_vm6 = vcmp.lt.s32.totalorder %v185_v3, %v193_v8  ;;  %vm196_vm7 = vcmp.lt.s32.totalorder %v186_v4, %v193_v8  ;;  %vm192_vm8 = vcmp.ge.s32.totalorder %v187_v5, %v188_v6  ;;  %p395_p13 = pneg %p394_p12 }
  0x4a   : > { %vm197_vm9 = vcmp.lt.s32.totalorder %v187_v5, %v193_v8  ;;  %vm198_vm10 = vmand %vm189_vm1, %vm194_vm5  ;;  %v228_v28 = vstv %s176_s27 }
  0x4b   : > { %vm199_vm11 = vmand %vm190_vm2, %vm195_vm6  ;;  %v210_v12 = vsel %vm198_vm10, %v179_v7, -inf  ;;  %vm229_vm14 = vcmp.eq.s32.totalorder %v184_v2, %v228_v28  ;;  %p402_p3 = pnand %p401_p2, %p395_p13 }
  0x4c   : > { %vm200_vm12 = vmand %vm191_vm4, %vm196_vm7  ;;  %v211_v13 = vsel %vm199_vm11, %v180_v9, -inf  ;;  %v215_v14 = vsel %vm214_vm3, %v210_v12, -inf }
  0x4d   : > { %vm201_vm13 = vmand %vm192_vm8, %vm197_vm9  ;;  %v212_v15 = vsel %vm200_vm12, %v181_v10, -inf  ;;  %v216_v16 = vsel %vm214_vm3, %v211_v13, -inf }
  0x4e   : > { %v213_v17 = vsel %vm201_vm13, %v182_v11, -inf  ;;  %v217_v18 = vsel %vm214_vm3, %v212_v15, -inf  ;;  %v219_v19 = vmax.f32 %v215_v14, %v216_v16 }
  0x4f   : > { %v218_v20 = vsel %vm214_vm3, %v213_v17, -inf }
  0x50   : > { %v220_v21 = vmax.f32 %v217_v18, %v218_v20 }
  0x52   : > { %v221_v22 = vmax.f32 %v219_v19, %v220_v21 }
  0x54   : > { %v222_v23 = vrot.slane %v221_v22, 4 }
  0x56   : > { %v223_v24 = vmax.f32 %v221_v22, %v222_v23 }
  0x58   : > { %v224_v25 = vrot.slane %v223_v24, 2 }
  0x5a   : > { %v225_v26 = vmax.f32 %v223_v24, %v224_v25 }
  0x5c   : > { %v226_v27 = vrot.slane %v225_v26, 1 }
  0x5e   : > { %v227_v30 = vmax.f32 %v225_v26, %v226_v27 }
  0x60   : > { %v231_v31 = vmax.f32 %v230_v29, %v227_v30 }
  0x62   : > { %v234_v32 = vsel %vm229_vm14, %v231_v31, %v230_v29 }
  0x63   : > { %236 = vst.msk [vmem:[#allocation7] sm:$0x3] %vm235_vm15, %v234_v32 }
  0x64   : > { %405 = shalt.err (!%p402_p3)
}
  0x65   : > { %s406_s9 = scalar_lea.hbm %s577_s5, 32 }
  0x66   : > { %p407_p4 = scmp.ne.s32.totalorder %s577_s5, %s406_s9  ;;  %p412_p7 = scmp.lt.u32.totalorder %s406_s9, %s577_s5 }
  0x68   : > { %p408_p5 = pnand %p407_p4, %p540_p10 }
  0x6a   : > { %p409_p6 = pneg %p408_p5 }
  0x6c   : > { %p414_p8 = pnand %p412_p7, %p409_p6 }
  0x6e   : > { %417 = shalt.err (!%p414_p8)
}
  0x6f   : > { %311 = dma.vmem_to_hbm [thread:$0]  (%p540_p10), %s247_s29, 32, %s577_s5, [#allocation8]  }
  0x70   : > { %433 = dma.done.wait (%p540_p10), [#allocation8], 32  }
  0x71   : > { %435 = vsyncadd (%p540_p10), [#allocation8], 4294967264 }
  0x72 PF: > { %s32_s16 = sadd.s32 1, %s446_s16   ;;  %s582_s3 = smov %s442_s15 }
  0x73   : > { %p29_p9 = scmp.ge.s32.totalorder %s32_s16, 4   ;;  %s583_s15 = smov %s585_s18 }
  0x75   :  { %31 = sbr.rel (!%p29_p9) target bundleno = 45 (0x2d), region = 56 }
  0x7c   :  { %259 = vsyncpa [#allocation8], 1 }
  0x7d   :  { %261 = vsyncpa [#allocation8 + $0x1], 1 }

</bundles_post_ra>
